<compile_context>
chip_gen: v5e
topology: v5e:2x2
jax: 0.10.0
libtpu: 0.0.40
codegen_flags: <defaults>
</compile_context>

<pallas_src>
import functools

import jax
import jax.numpy as jnp
from jax.experimental import pallas as pl
from jax.experimental.pallas import tpu as pltpu

_SUBLANE = 8    # f32 sublane granularity
_LANE = 128     # lane granularity

_ACT = {
    "sigmoid": jax.nn.sigmoid,
    "relu": jax.nn.relu,
    "tanh": jnp.tanh,
    "linear": lambda x: x,
}


def _round_up(x, m):
    return (x + m - 1) // m * m


# --------------------------------------------------------------------------
# Parameter packing (done once, reused every call).
# --------------------------------------------------------------------------
def pack_params(wi, wh, wo, b_h):
    """Pack/pad PyTorch-convention weights once.

      wi : [H, D]  (i2h.weight)    wh : [H, H] (h2h.weight)
      wo : [H, O]  (o2h.weight)    b_h: [H]    (h2h.bias)

    Returns (w_io, w_h, b):
      w_io: [KIO_pad, H_pad] bf16, rows [Wi^T ; Wo^T], zero-padded
      w_h : [H_pad,  H_pad]  bf16, Wh^T, zero-padded
      b   : [1, H_pad]       f32
    """
    H, D = wi.shape
    O = wo.shape[1]
    kio = D + O
    kio_pad = _round_up(kio, _LANE)
    h_pad = _round_up(H, _LANE)
    w_io = jnp.concatenate([wi.T, wo.T], axis=0).astype(jnp.float32)
    w_io = jnp.pad(w_io, ((0, kio_pad - kio), (0, h_pad - H))).astype(jnp.bfloat16)
    w_h = jnp.pad(wh.T.astype(jnp.float32),
                  ((0, h_pad - H), (0, h_pad - H))).astype(jnp.bfloat16)
    b = jnp.pad(b_h.astype(jnp.float32).reshape(1, H), ((0, 0), (0, h_pad - H)))
    return w_io, w_h, b


# --------------------------------------------------------------------------
# Kernels.
# --------------------------------------------------------------------------
def _proj_kernel(xo_ref, w_ref, b_ref, z_ref):
    # Hoisted non-recurrent projection for all T*B rows: one MXU matmul
    # (bf16 x bf16 -> f32 accumulate) + bias broadcast in the epilogue.
    z_ref[...] = jnp.dot(xo_ref[...], w_ref[...],
                         preferred_element_type=jnp.float32) + b_ref[...]


def _recurrence_kernel(z_ref, w_h_ref, h0_ref, h_seq_ref, h_sc, *, nonlin):
    # One grid step = one cell step. W_h / h0 are VMEM-resident; h is carried
    # in a bf16 VMEM scratch across the (sequential, "arbitrary") T axis.
    t = pl.program_id(0)

    @pl.when(t == 0)
    def _():
        h_sc[...] = h0_ref[...]

    pre = z_ref[...] + jnp.dot(h_sc[...], w_h_ref[...],
                               preferred_element_type=jnp.float32)
    h = _ACT[nonlin](pre)                       # f32 activation epilogue
    h_seq_ref[...] = h                          # lane-dense [B_pad, 128] store
    h_sc[...] = h.astype(jnp.bfloat16)          # carry for step t+1


# --------------------------------------------------------------------------
# Wrappers.
# --------------------------------------------------------------------------
@functools.partial(jax.jit, static_argnames=("nonlin",))
def rnn_cell_sequence(data_seq, o_prev_seq, h0, w_io, w_h, b, *, nonlin="sigmoid"):
    """Apply the RNN cell over T steps with a single recurrence launch.

      data_seq  : [T, B, D]  input at each step t
      o_prev_seq: [T, B, O]  output feedback fed to step t (i.e. o_{t-1})
      h0        : [B, H]     initial hidden state

    Returns h_seq_pad: [T, B_pad, H_pad] float32; valid region [:, :B, :H].
    """
    T, B, D = data_seq.shape
    O = o_prev_seq.shape[2]
    H = h0.shape[1]
    kio_pad, h_pad = w_io.shape
    # Robustness: packed weights must match the problem sizes.
    assert D + O <= kio_pad and H <= h_pad, "packed weights do not match D/O/H"
    assert w_h.shape == (h_pad, h_pad) and b.shape == (1, h_pad)
    b_pad = _round_up(B, _SUBLANE)

    # One-time host-side packing for the whole sequence (not per step).
    xo = jnp.concatenate([data_seq, o_prev_seq], axis=-1).astype(jnp.bfloat16)
    xo = jnp.pad(xo, ((0, 0), (0, b_pad - B), (0, kio_pad - (D + O))))
    xo = xo.reshape(T * b_pad, kio_pad)
    h0p = jnp.pad(h0.astype(jnp.bfloat16), ((0, b_pad - B), (0, h_pad - H)))

    vmem = pl.BlockSpec(memory_space=pltpu.VMEM)

    # Stage 1: hoisted projection (+ bias), one big MXU matmul for all steps.
    z = pl.pallas_call(
        _proj_kernel,
        out_shape=jax.ShapeDtypeStruct((T * b_pad, h_pad), jnp.float32),
        in_specs=[vmem, vmem, vmem],
        out_specs=vmem,
    )(xo, w_io, b)

    # Stage 2: fused recurrence over T steps in one launch.
    grid_spec = pltpu.PrefetchScalarGridSpec(
        num_scalar_prefetch=0,
        grid=(T,),
        in_specs=[
            pl.BlockSpec((b_pad, h_pad), lambda t: (t, 0)),   # z_t (streamed)
            pl.BlockSpec((h_pad, h_pad), lambda t: (0, 0)),   # W_h (resident)
            pl.BlockSpec((b_pad, h_pad), lambda t: (0, 0)),   # h0  (resident)
        ],
        out_specs=pl.BlockSpec((b_pad, h_pad), lambda t: (t, 0)),
        scratch_shapes=[pltpu.VMEM((b_pad, h_pad), jnp.bfloat16)],  # h carry
    )
    h_seq = pl.pallas_call(
        functools.partial(_recurrence_kernel, nonlin=nonlin),
        out_shape=jax.ShapeDtypeStruct((T * b_pad, h_pad), jnp.float32),
        grid_spec=grid_spec,
        compiler_params=pltpu.CompilerParams(
            dimension_semantics=("arbitrary",)),
    )(z, w_h, h0p)
    return h_seq.reshape(T, b_pad, h_pad)


def rnn_cell_forward(data, h_prev, o_prev, w_io, w_h, b, *, nonlin="sigmoid"):
    """Exact single-step RNNcell.forward (routes through the T=1 sequence)."""
    B = data.shape[0]
    H = h_prev.shape[1]
    h_seq = rnn_cell_sequence(data[None], o_prev[None], h_prev,
                              w_io, w_h, b, nonlin=nonlin)
    return h_seq[0, :B, :H]


# --------------------------------------------------------------------------
# Demo / self-check.
# --------------------------------------------------------------------------
if __name__ == "__main__":
    B = 2       # batch
    DATA = 16   # data_size
    HID = 32    # hidden_size
    OUT = 8     # output_size
    T = 8       # sequence length (cell iterated T times)
    FS = 0.5    # feedback_scaling

    key = jax.random.PRNGKey(0)
    k_wh, k_wi, k_wo, k_x, k_h, k_o = jax.random.split(key, 6)

    # Parameter init mirrors RNNcell.__init__ (nn.Linear stores [out, in]):
    wh = jax.random.uniform(k_wh, (HID, HID), jnp.float32, -0.5, 0.5)
    bh = jnp.full((HID,), -1.0, jnp.float32)
    wi = jax.random.uniform(k_wi, (HID, DATA), jnp.float32, -1.0, 1.0)
    wo = jax.random.uniform(k_wo, (HID, OUT), jnp.float32, -FS, FS)

    data_seq = jax.random.normal(k_x, (T, B, DATA), jnp.float32)
    o_seq = jax.random.normal(k_o, (T, B, OUT), jnp.float32)   # feedback per step
    h0 = jax.random.normal(k_h, (B, HID), jnp.float32)

    w_io, w_h, b = pack_params(wi, wh, wo, bh)

    h_seq_pad = rnn_cell_sequence(data_seq, o_seq, h0, w_io, w_h, b)
    h_seq_pad = jax.block_until_ready(h_seq_pad)
    h_seq = h_seq_pad[:, :B, :HID]
    assert h_seq.shape == (T, B, HID)

    act = jax.nn.sigmoid

    # (a) Tight check vs a reference that applies the same bf16 casts
    #     (f32 accumulation, f32 activation) — validates the kernel itself.
    wi_b, wh_b, wo_b = (w.astype(jnp.bfloat16) for w in (wi, wh, wo))
    h_ref_bf16 = []
    h = h0
    for t in range(T):
        pre = (jnp.dot(data_seq[t].astype(jnp.bfloat16), wi_b.T,
                       preferred_element_type=jnp.float32)
               + jnp.dot(o_seq[t].astype(jnp.bfloat16), wo_b.T,
                         preferred_element_type=jnp.float32)
               + jnp.dot(h.astype(jnp.bfloat16), wh_b.T,
                         preferred_element_type=jnp.float32)
               + bh)
        h = act(pre)
        h_ref_bf16.append(h)
    h_ref_bf16 = jnp.stack(h_ref_bf16)
    assert jnp.allclose(h_seq, h_ref_bf16, atol=2e-3, rtol=2e-3), \
        "mismatch vs bf16-matched reference"

    # (b) Sanity check vs the pure-f32 module semantics (tolerance covers the
    #     bf16 streaming of data/h/o/weights).
    h_ref_f32 = []
    h = h0
    for t in range(T):
        h = act(data_seq[t] @ wi.T + h @ wh.T + bh + o_seq[t] @ wo.T)
        h_ref_f32.append(h)
    h_ref_f32 = jnp.stack(h_ref_f32)
    assert jnp.allclose(h_seq, h_ref_f32, atol=3e-2, rtol=3e-2), \
        "mismatch vs f32 module reference"

    # (c) Single-step API, exactly the module's forward signature.
    h1 = rnn_cell_forward(data_seq[0], h0, o_seq[0], w_io, w_h, b)
    h1 = jax.block_until_ready(h1)
    ref1 = act(data_seq[0] @ wi.T + h0 @ wh.T + bh + o_seq[0] @ wo.T)
    assert h1.shape == (B, HID)
    assert jnp.allclose(h1, ref1, atol=3e-2, rtol=3e-2), "single-step mismatch"

    print("KERNEL_OK")
</pallas_src>

<mosaic_0001>
module attributes {stable_mosaic.version = 11 : i64} {
  func.func @_proj_kernel(%arg0: memref<64x128xbf16, #tpu.memory_space<vmem>>, %arg1: memref<128x128xbf16, #tpu.memory_space<vmem>>, %arg2: memref<1x128xf32, #tpu.memory_space<vmem>>, %arg3: memref<64x128xf32, #tpu.memory_space<vmem>>) attributes {dimension_semantics = [], scalar_prefetch = 0 : i64, scratch_operands = 0 : i64, tpu.core_type = #tpu.core_type<tc>} {
    %c0 = arith.constant 0 : index
    %c0_0 = arith.constant 0 : index
    %0 = vector.load %arg0[%c0, %c0_0] : memref<64x128xbf16, #tpu.memory_space<vmem>>, vector<64x128xbf16>
    %c0_1 = arith.constant 0 : index
    %c0_2 = arith.constant 0 : index
    %1 = vector.load %arg1[%c0_1, %c0_2] : memref<128x128xbf16, #tpu.memory_space<vmem>>, vector<128x128xbf16>
    %cst = arith.constant dense<0.000000e+00> : vector<64x128xf32>
    %2 = tpu.matmul %0, %1, %cst {dimension_numbers = #tpu.dot_dimension_numbers<[1], [0], [0], [1], [0, 0, 1, 1], [], []>} : vector<64x128xbf16>, vector<128x128xbf16>, vector<64x128xf32> -> vector<64x128xf32>
    %c0_3 = arith.constant 0 : index
    %c0_4 = arith.constant 0 : index
    %3 = vector.load %arg2[%c0_3, %c0_4] : memref<1x128xf32, #tpu.memory_space<vmem>>, vector<1x128xf32>
    %4 = vector.broadcast %3 : vector<1x128xf32> to vector<64x128xf32>
    %5 = arith.addf %2, %4 : vector<64x128xf32>
    %c0_5 = arith.constant 0 : index
    %c0_6 = arith.constant 0 : index
    %6 = vector.load %arg3[%c0_5, %c0_6] : memref<64x128xf32, #tpu.memory_space<vmem>>, vector<64x128xf32>
    tpu.vector_store %arg3[%c0_5, %c0_6], %5 {strides = array<i32>} : memref<64x128xf32, #tpu.memory_space<vmem>>, vector<64x128xf32>,
    return
  }
}

module attributes {stable_mosaic.version = 11 : i64} {
  func.func @_recurrence_kernel(%arg0: i32, %arg1: memref<8x128xf32, #tpu.memory_space<vmem>>, %arg2: memref<128x128xbf16, #tpu.memory_space<vmem>>, %arg3: memref<8x128xbf16, #tpu.memory_space<vmem>>, %arg4: memref<8x128xf32, #tpu.memory_space<vmem>>, %arg5: memref<8x128xbf16, #tpu.memory_space<vmem>>) attributes {dimension_semantics = [#tpu.dimension_semantics<arbitrary>], iteration_bounds = array<i64: 8>, scalar_prefetch = 0 : i64, scratch_operands = 1 : i64, tpu.core_type = #tpu.core_type<tc>, window_params = [{transform_indices = @transform_0, window_bounds = array<i64: 8, 128>}, {pipeline_mode = #tpu.pipeline_mode<synchronous>, transform_indices = @transform_1, window_bounds = array<i64: 128, 128>}, {pipeline_mode = #tpu.pipeline_mode<synchronous>, transform_indices = @transform_2, window_bounds = array<i64: 8, 128>}, {transform_indices = @transform_3, window_bounds = array<i64: 8, 128>}]} {
    %c0_i32 = arith.constant 0 : i32
    %0 = arith.cmpi eq, %arg0, %c0_i32 : i32
    %1 = arith.extui %0 : i1 to i32
    %c0_i32_0 = arith.constant 0 : i32
    %2 = arith.cmpi ne, %1, %c0_i32_0 : i32
    scf.if %2 {
      %c0_11 = arith.constant 0 : index
      %c0_12 = arith.constant 0 : index
      %16 = vector.load %arg3[%c0_11, %c0_12] : memref<8x128xbf16, #tpu.memory_space<vmem>>, vector<8x128xbf16>
      %c0_13 = arith.constant 0 : index
      %c0_14 = arith.constant 0 : index
      %17 = vector.load %arg5[%c0_13, %c0_14] : memref<8x128xbf16, #tpu.memory_space<vmem>>, vector<8x128xbf16>
      tpu.vector_store %arg5[%c0_13, %c0_14], %16 {strides = array<i32>} : memref<8x128xbf16, #tpu.memory_space<vmem>>, vector<8x128xbf16>,
    } else {
    }
    %c0 = arith.constant 0 : index
    %c0_1 = arith.constant 0 : index
    %3 = vector.load %arg1[%c0, %c0_1] : memref<8x128xf32, #tpu.memory_space<vmem>>, vector<8x128xf32>
    %c0_2 = arith.constant 0 : index
    %c0_3 = arith.constant 0 : index
    %4 = vector.load %arg5[%c0_2, %c0_3] : memref<8x128xbf16, #tpu.memory_space<vmem>>, vector<8x128xbf16>
    %c0_4 = arith.constant 0 : index
    %c0_5 = arith.constant 0 : index
    %5 = vector.load %arg2[%c0_4, %c0_5] : memref<128x128xbf16, #tpu.memory_space<vmem>>, vector<128x128xbf16>
    %cst = arith.constant dense<0.000000e+00> : vector<8x128xf32>
    %6 = tpu.matmul %4, %5, %cst {dimension_numbers = #tpu.dot_dimension_numbers<[1], [0], [0], [1], [0, 0, 1, 1], [], []>} : vector<8x128xbf16>, vector<128x128xbf16>, vector<8x128xf32> -> vector<8x128xf32>
    %7 = arith.addf %3, %6 : vector<8x128xf32>
    %8 = arith.negf %7 : vector<8x128xf32>
    %9 = math.exp %8 : vector<8x128xf32>
    %cst_6 = arith.constant 1.000000e+00 : f32
    %10 = vector.broadcast %cst_6 : f32 to vector<8x128xf32>
    %11 = arith.addf %10, %9 : vector<8x128xf32>
    %12 = arith.divf %10, %11 : vector<8x128xf32>
    %c0_7 = arith.constant 0 : index
    %c0_8 = arith.constant 0 : index
    %13 = vector.load %arg4[%c0_7, %c0_8] : memref<8x128xf32, #tpu.memory_space<vmem>>, vector<8x128xf32>
    tpu.vector_store %arg4[%c0_7, %c0_8], %12 {strides = array<i32>} : memref<8x128xf32, #tpu.memory_space<vmem>>, vector<8x128xf32>,
    %14 = arith.truncf %12 : vector<8x128xf32> to vector<8x128xbf16>
    %c0_9 = arith.constant 0 : index
    %c0_10 = arith.constant 0 : index
    %15 = vector.load %arg5[%c0_9, %c0_10] : memref<8x128xbf16, #tpu.memory_space<vmem>>, vector<8x128xbf16>
    tpu.vector_store %arg5[%c0_9, %c0_10], %14 {strides = array<i32>} : memref<8x128xbf16, #tpu.memory_space<vmem>>, vector<8x128xbf16>,
    return
  }
  func.func @transform_0(%arg0: i32) -> (i32, i32) {
    %c0_i32 = arith.constant 0 : i32
    %c0_i32_0 = arith.constant 0 : i32
    return %arg0, %c0_i32 : i32, i32
  }
  func.func @transform_1(%arg0: i32) -> (i32, i32) {
    %c0_i32 = arith.constant 0 : i32
    %c0_i32_0 = arith.constant 0 : i32
    %c0_i32_1 = arith.constant 0 : i32
    return %c0_i32, %c0_i32_0 : i32, i32
  }
  func.func @transform_2(%arg0: i32) -> (i32, i32) {
    %c0_i32 = arith.constant 0 : i32
    %c0_i32_0 = arith.constant 0 : i32
    %c0_i32_1 = arith.constant 0 : i32
    return %c0_i32, %c0_i32_0 : i32, i32
  }
  func.func @transform_3(%arg0: i32) -> (i32, i32) {
    %c0_i32 = arith.constant 0 : i32
    %c0_i32_0 = arith.constant 0 : i32
    return %arg0, %c0_i32 : i32, i32
  }
}

</mosaic_0001>

<bundles_post_ra>
// kernel: rnn_cell_sequence.3
= control target key start
LH: loop header
LB: loop body
LE: loop exit
PB: predicated region body
PF: predicated region fallthrough
CT: control target
= control target key end

     0   :  { %8 = vsyncpa [#allocation4], 0  ;;  %s721_s0 = inlined_call_operand.vmem [shape: f32[64,128], index: 0, kind: input, shape index: {}]   ;;  %s722_s1 = inlined_call_operand.hbm [shape: bf16[128,128], index: 1, kind: input, shape index: {}]   ;;  %s723_s2 = inlined_call_operand.vmem [shape: bf16[8,128], index: 2, kind: input, shape index: {}]   ;;  %s724_s3 = inlined_call_operand.hbm [shape: f32[64,128], index: 3, kind: output, shape index: {}]  }
   0x1   :  { %9 = vsyncpa [#allocation5], 0 }
   0x2   :  { %11 = vsyncpa [#allocation5 + $0x1], 0  ;;  %s609_s12 = smov 0   ;;  %s611_s13 = smov 0  }
   0x3   :  { %s613_s14 = smov 0   ;;  %s615_s15 = smov 0  }
   0x4 LB: > { %s630_s16 = sadd.s32 4294967295, %s584_s15   ;;  %s378_s17 = sadd.s32 4294967294, %s584_s15   ;;  %s584_s15 = sphi %s615_s15, %s730_s15   ;;  %s580_s14 = sphi %s613_s14, %s729_s14   ;;  %s576_s13 = sphi %s611_s13, %s728_s13   ;;  %s572_s12 = sphi %s609_s12, %s727_s12  }
   0x5   : > { %s634_s18 = sadd.s32 1, %s584_s15   ;;  %s92_s19 = sadd.s32 1, %s580_s14 }
   0x6   : > { %s89_s20 = ssub.s32 %s584_s15, %s634_s18  ;;  %p102_p0 = scmp.ne.s32.totalorder %s580_s14, %s576_s13 }
   0x7   : > { %p90_p1 = scmp.eq.s32.totalorder %s89_s20, 0  ;;  %p103_p2 = scmp.eq.s32.totalorder %s630_s16, 7 }
   0x8   : > { %p108_p3 = scmp.ne.s32.totalorder %s576_s13, %s572_s12  ;;  %p109_p4 = scmp.eq.s32.totalorder %s378_s17, 7 }
   0x9   : > { %s645_s21 = scalar_select %p90_p1, %s580_s14, %s92_s19  }
   0xa   : > { %p647_p5 = por %p103_p2, %p102_p0  ;;  %p651_p6 = por %p109_p4, %p108_p3 }
   0xb   : > { %p379_p7 = scmp.ge.s32.totalorder %s584_s15, 1  ;;  %p116_p8 = scmp.lt.s32.totalorder %s584_s15, 9 }
   0xc   : > { %p380_p9 = scmp.ne.s32.totalorder %s630_s16, 0  ;;  %p446_p10 = scmp.eq.s32.totalorder %s630_s16, 0 }
   0xd   : > { %p117_p11 = pnand %p379_p7, %p116_p8  ;;  %s127_s26 = sshll.u32 %s722_s1, 4  ;;  %s128_s26 = int_to_ptr.hbm [resolvable:$true] %s127_s26 }
   0xe   : > { %s586_s27 = smov [#allocation3]   ;;  %s587_s29 = smov 64  }
   0xf   : > { %p438_p12 = pneg %p117_p11  ;;  %s129_s28 = sshll.u32 %s586_s27, 4  ;;  %s130_s28 = int_to_ptr.vmem [resolvable:$true] %s129_s28 }
  0x10   : > { %s588_s30 = smov 4   ;;  %155 = sbr.rel (%p117_p11) target bundleno = 221 (0xdd), region = 32 }
  0x11   : > { %p439_p13 = pnand %p446_p10, %p438_p12 }
  0x13   : > { %441 = dma.hbm_to_vmem [thread:$0]  (!%p439_p13), %s128_s26, 1024, %s130_s28, [#allocation4], %s587_s29, %s587_s29, %s588_s30  }
  0x15   : > { %563 = dma.done.wait (%p446_p10), [#allocation4], 1024  }
  0x16   : > { %565 = vsyncadd (%p446_p10), [#allocation4], 4294966272  ;;  %s176_s4 = sand.u32 1, %s576_s13   ;;  %p179_p0 = scmp.lt.s32.totalorder %s630_s16, 7 }
  0x17   : > { %s672_s5 = sshll.u32 %s176_s4, 3  ;;  %186 = sbr.rel (%p380_p9) target bundleno = 30 (0x1e), region = 40 }
  0x18   : > { %s180_s6 = scalar_select %p179_p0, %s630_s16, 7 }
  0x19   : > { %s178_s11 = scalar_lea.vmem [#allocation6], %s672_s5 }
  0x1a   : > { %s385_s7 = sshll.u32 %s180_s6, 3 }
  0x1b   : > { %s182_s10 = scalar_lea.vmem %s721_s0, %s385_s7 }
  0x1c   : > { %v187_v0 = vld [vmem:[%s723_s2] sm:$0xf] }
  0x1d   : > { %188 = vst [vmem:[#allocation2] sm:$0xf] %v187_v0 }
  0x1e PF: > { %v431_v1 = vld [vmem:[#allocation3 + $0x38] sm:$0xff]  ;;  %v430_v2 = vld [vmem:[#allocation3 + $0x30] sm:$0xff]  ;;  %v429_v3 = vld [vmem:[#allocation3 + $0x28] sm:$0xff]  ;;  %s421_s20 = sshll.u32 %s630_s16, 3  ;;  %s304_s27 = sshll.u32 %s178_s11, 4  ;;  %s305_s27 = int_to_ptr.vmem [resolvable:$true] %s304_s27 }
  0x1f   : > { %255 = vmatpush.bf16.msra.mxu0 %v431_v1  ;;  %v428_v4 = vld [vmem:[#allocation3 + $0x20] sm:$0xff]  ;;  %v427_v5 = vld [vmem:[#allocation3 + $0x18] sm:$0xff]  ;;  %v426_v6 = vld [vmem:[#allocation3 + $0x10] sm:$0xff]  ;;  %s302_s26 = scalar_lea.hbm %s724_s3, %s421_s20  ;;  %s292_s16 = scalar_lea.sflag [#allocation5], %s176_s4 }
  0x20   : > { %v425_v7 = vld [vmem:[#allocation3 + $0x8] sm:$0xff]  ;;  %v424_v8 = vld [vmem:[#allocation3] sm:$0xff]  ;;  %s306_s28 = sshll.u32 %s302_s26, 4  ;;  %s538_s8 = scalar_lea.hbm %s724_s3, 64  ;;  %s307_s28 = int_to_ptr.hbm [resolvable:$true] %s306_s28 }
  0x21   : > { %v189_v10 = vld [vmem:[%s182_s10] sm:$0xff]  ;;  %s532_s29 = sshra.s32 %s307_s28, 4  ;;  %s533_s29 = int_to_ptr.hbm [resolvable:$true] %s532_s29 }
  0x22   : > { %s534_s30 = scalar_lea.hbm %s533_s29, 8  ;;  %p539_p4 = scmp.lt.s32.totalorder %s533_s29, %s724_s3 }
  0x23   : > { %256 = vmatpush.bf16.msra.mxu0 %v430_v2  ;;  %p535_p1 = scmp.ne.s32.totalorder %s533_s29, %s534_s30  ;;  %p540_p7 = scmp.lt.s32.totalorder %s538_s8, %s534_s30 }
  0x24   : > { %v190_v9 = vld [vmem:[#allocation2] sm:$0xf] }
  0x25   : > { %p536_p2 = pnand %p535_p1, %p647_p5  ;;  %p541_p8 = por %p540_p7, %p539_p4 }
  0x27   : > { %257 = vmatpush.bf16.msra.mxu0 %v429_v3  ;;  %p537_p3 = pneg %p536_p2 }
  0x29   : > { %p542_p9 = pnand %p541_p8, %p537_p3 }
  0x2b   : > { %258 = vmatpush.bf16.msra.mxu0 %v428_v4 }
  0x2f   : > { %259 = vmatpush.bf16.msra.mxu0 %v427_v5 }
  0x33   : > { %260 = vmatpush.bf16.msra.mxu0 %v426_v6 }
  0x37   : > { %261 = vmatpush.bf16.msra.mxu0 %v425_v7 }
  0x3b   : > { %262 = vmatpush.bf16.msra.mxu0 %v424_v8 }
  0x3e   : > { %263 = vmatmul.bf16.vlgmr.msra.gmra.mxu0 %v190_v9 }
  0xbb   : > { %v264_v11 = vpop.f32.mrf.mxu0 }
  0xbc   : > { %v268_v12 = vadd.f32 %v264_v11, %v189_v10 }
  0xbe   : > { %v419_v13 = vmul.f32 -1.442695, %v268_v12 }
  0xc0   : > { %484 = vpow2.f32 %v419_v13 }
  0xc3   : > { %v266_v14 = vpop.f32.mrf.mxu0 }
  0xc6   : > { %v485_v15 = vpop.eup %484 }
  0xc7   : > { %v272_v16 = vadd.f32 1.0, %v485_v15 }
  0xc9   : > { %486 = vrcp.f32 %v272_v16  ;;  %v284_v20 = vand.u32 2147483648, %v272_v16  ;;  %v282_v22 = vand.u32 2147483647, %v272_v16  ;;  %vm278_vm1 = vweird.f32 %v272_v16 }
  0xcb   : > { %v285_v24 = vor.u32 1.1754944e-38, %v284_v20  ;;  %vm283_vm3 = vcmp.eq.f32.partialorder %v282_v22, 8.507059e+37 }
  0xcf   : > { %v487_v17 = vpop.eup %486 }
  0xd0   : > { %v274_v18 = vmul.f32 %v487_v17, %v272_v16  ;;  %vm279_vm0 = vweird.f32 %v487_v17 }
  0xd1   : > { %vm280_vm2 = vmor %vm278_vm1, %vm279_vm0 }
  0xd2   : > { %v275_v19 = vsub.f32 1.0, %v274_v18 }
  0xd4   : > { %v276_v21 = vmul.f32 %v487_v17, %v275_v19 }
  0xd6   : > { %v277_v23 = vadd.f32 %v487_v17, %v276_v21 }
  0xd8   : > { %v281_v25 = vsel %vm280_vm2, %v487_v17, %v277_v23 }
  0xd9   : > { %v286_v26 = vsel %vm283_vm3, %v285_v24, %v281_v25 }
  0xda   : > { %288 = vst [vmem:[%s178_s11] sm:$0xff] %v286_v26  ;;  %v289_v27 = vpack.c.bf16 %v286_v26, %v286_v26 }
  0xdb   : > { %545 = shalt.err (!%p542_p9)
}
  0xdc   : > { %436 = dma.vmem_to_hbm [thread:$0]  (%p647_p5), %s305_s27, 128, %s307_s28, %s292_s16   ;;  %290 = vst [vmem:[#allocation2] sm:$0xf] %v289_v27 }
  0xdd PF: > { %p448_p10 = scmp.ge.s32.totalorder %s584_s15, 2  ;;  %s318_s4 = sand.u32 1, %s572_s12  }
  0xde   : > { %s319_s5 = scalar_lea.sflag [#allocation5], %s318_s4 }
  0xdf   : > { %p443_p11 = pnand %p448_p10, %p651_p6 }
  0xe1   : > { %p444_p12 = pneg %p443_p11 }
  0xe3   : > { %567 = dma.done.wait (%p444_p12), %s319_s5, 128  }
  0xe4   : > { %569 = vsyncadd (%p444_p12), %s319_s5, 4294967168  ;;  %p14_p13 = scmp.ge.s32.totalorder %s634_s18, 10   ;;  %s727_s12 = smov %s576_s13 }
  0xe5   : > { %s728_s13 = smov %s580_s14  ;;  %s729_s14 = smov %s645_s21 }
  0xe6   : > { %s730_s15 = smov %s634_s18  ;;  %16 = sbr.rel (!%p14_p13) target bundleno = 4 (0x4), region = 76 }
  0xeb   :  { %325 = vsyncpa [#allocation4], 1 }
  0xec   :  { %327 = vsyncpa [#allocation4 + $0x1], 1 }
  0xed   :  { %328 = vsyncpa [#allocation5], 1 }
  0xee   :  { %330 = vsyncpa [#allocation5 + $0x1], 1 }

// kernel: rnn_cell_sequence.2
= control target key start
LH: loop header
LB: loop body
LE: loop exit
PB: predicated region body
PF: predicated region fallthrough
CT: control target
= control target key end

     0   :  { %s323_s1 = inlined_call_operand.vmem [shape: bf16[128,128], index: 1, kind: input, shape index: {}]   ;;  %s324_s2 = inlined_call_operand.vmem [shape: f32[1,128], index: 2, kind: input, shape index: {}]   ;;  %s325_s0 = inlined_call_operand.vmem [shape: bf16[64,128], index: 0, kind: input, shape index: {}]   ;;  %s326_s3 = inlined_call_operand.vmem [shape: f32[64,128], index: 3, kind: output, shape index: {}]  }
   0x1   :  { %v214_v0 = vld [vmem:[%s323_s1 + $0x38] sm:$0xff]  ;;  %v213_v1 = vld [vmem:[%s323_s1 + $0x30] sm:$0xff]  ;;  %v212_v2 = vld [vmem:[%s323_s1 + $0x28] sm:$0xff] }
   0x2   :  { %114 = vmatpush.bf16.msra.mxu0 %v214_v0  ;;  %215 = vmatpush.bf16.msra.mxu1 %v214_v0  ;;  %v211_v3 = vld [vmem:[%s323_s1 + $0x20] sm:$0xff]  ;;  %v210_v4 = vld [vmem:[%s323_s1 + $0x18] sm:$0xff]  ;;  %v209_v5 = vld [vmem:[%s323_s1 + $0x10] sm:$0xff] }
   0x3   :  { %216 = vmatpush.bf16.msra.mxu2 %v214_v0  ;;  %217 = vmatpush.bf16.msra.mxu3 %v214_v0  ;;  %v208_v6 = vld [vmem:[%s323_s1 + $0x8] sm:$0xff]  ;;  %v207_v7 = vld [vmem:[%s323_s1] sm:$0xff]  ;;  %v205_v10 = vld [vmem:[%s325_s0 + $0x10] sm:$0xff] }
   0x4   :  { %v203_v8 = vld [vmem:[%s325_s0] sm:$0xff]  ;;  %v204_v9 = vld [vmem:[%s325_s0 + $0x8] sm:$0xff]  ;;  %v206_v11 = vld [vmem:[%s325_s0 + $0x18] sm:$0xff] }
   0x5   :  { %v239_v12 = vld [vmem:[%s324_s2] ss:$0 sm:$0xff] }
   0x6   :  { %115 = vmatpush.bf16.msra.mxu0 %v213_v1  ;;  %218 = vmatpush.bf16.msra.mxu1 %v213_v1 }
   0x7   :  { %219 = vmatpush.bf16.msra.mxu2 %v213_v1  ;;  %220 = vmatpush.bf16.msra.mxu3 %v213_v1 }
   0xa   :  { %116 = vmatpush.bf16.msra.mxu0 %v212_v2  ;;  %221 = vmatpush.bf16.msra.mxu1 %v212_v2 }
   0xb   :  { %222 = vmatpush.bf16.msra.mxu2 %v212_v2  ;;  %223 = vmatpush.bf16.msra.mxu3 %v212_v2 }
   0xe   :  { %117 = vmatpush.bf16.msra.mxu0 %v211_v3  ;;  %224 = vmatpush.bf16.msra.mxu1 %v211_v3 }
   0xf   :  { %225 = vmatpush.bf16.msra.mxu2 %v211_v3  ;;  %226 = vmatpush.bf16.msra.mxu3 %v211_v3 }
  0x12   :  { %118 = vmatpush.bf16.msra.mxu0 %v210_v4  ;;  %227 = vmatpush.bf16.msra.mxu1 %v210_v4 }
  0x13   :  { %228 = vmatpush.bf16.msra.mxu2 %v210_v4  ;;  %229 = vmatpush.bf16.msra.mxu3 %v210_v4 }
  0x16   :  { %119 = vmatpush.bf16.msra.mxu0 %v209_v5  ;;  %230 = vmatpush.bf16.msra.mxu1 %v209_v5 }
  0x17   :  { %231 = vmatpush.bf16.msra.mxu2 %v209_v5  ;;  %232 = vmatpush.bf16.msra.mxu3 %v209_v5 }
  0x1a   :  { %120 = vmatpush.bf16.msra.mxu0 %v208_v6  ;;  %233 = vmatpush.bf16.msra.mxu1 %v208_v6 }
  0x1b   :  { %234 = vmatpush.bf16.msra.mxu2 %v208_v6  ;;  %235 = vmatpush.bf16.msra.mxu3 %v208_v6 }
  0x1e   :  { %121 = vmatpush.bf16.msra.mxu0 %v207_v7  ;;  %236 = vmatpush.bf16.msra.mxu1 %v207_v7 }
  0x1f   :  { %237 = vmatpush.bf16.msra.mxu2 %v207_v7  ;;  %238 = vmatpush.bf16.msra.mxu3 %v207_v7 }
  0x21   :  { %122 = vmatmul.bf16.vlgmr.msra.gmra.mxu0 %v203_v8  ;;  %127 = vmatmul.bf16.vlgmr.msra.gmra.mxu1 %v204_v9 }
  0x22   :  { %132 = vmatmul.bf16.vlgmr.msra.gmra.mxu2 %v205_v10  ;;  %137 = vmatmul.bf16.vlgmr.msra.gmra.mxu3 %v206_v11 }
  0x9e   :  { %v123_v13 = vpop.f32.mrf.mxu0  ;;  %v128_v14 = vpop.f32.mrf.mxu1 }
  0x9f   :  { %v124_v15 = vadd.f32 %v239_v12, %v123_v13  ;;  %v129_v16 = vadd.f32 %v239_v12, %v128_v14 }
  0xa1   :  { %143 = vst [vmem:[%s326_s3] sm:$0xff] %v124_v15 }
  0xa2   :  { %145 = vst [vmem:[%s326_s3 + $0x10] sm:$0xff] %v129_v16 }
  0xa5   :  { %v133_v17 = vpop.f32.mrf.mxu2  ;;  %v138_v18 = vpop.f32.mrf.mxu3 }
  0xa6   :  { %v134_v19 = vadd.f32 %v239_v12, %v133_v17  ;;  %v139_v20 = vadd.f32 %v239_v12, %v138_v18  ;;  %v125_v21 = vpop.f32.mrf.mxu0  ;;  %v130_v22 = vpop.f32.mrf.mxu1 }
  0xa7   :  { %v126_v23 = vadd.f32 %v239_v12, %v125_v21  ;;  %v131_v24 = vadd.f32 %v239_v12, %v130_v22 }
  0xa8   :  { %147 = vst [vmem:[%s326_s3 + $0x20] sm:$0xff] %v134_v19 }
  0xa9   :  { %149 = vst [vmem:[%s326_s3 + $0x30] sm:$0xff] %v139_v20 }
  0xaa   :  { %144 = vst [vmem:[%s326_s3 + $0x8] sm:$0xff] %v126_v23 }
  0xab   :  { %146 = vst [vmem:[%s326_s3 + $0x18] sm:$0xff] %v131_v24 }
  0xad   :  { %v135_v25 = vpop.f32.mrf.mxu2  ;;  %v140_v26 = vpop.f32.mrf.mxu3 }
  0xae   :  { %v136_v27 = vadd.f32 %v239_v12, %v135_v25  ;;  %v141_v28 = vadd.f32 %v239_v12, %v140_v26 }
  0xb0   :  { %148 = vst [vmem:[%s326_s3 + $0x28] sm:$0xff] %v136_v27 }
  0xb1   :  { %150 = vst [vmem:[%s326_s3 + $0x38] sm:$0xff] %v141_v28 }

</bundles_post_ra>
